<compile_context>
chip_gen: v7x
topology: tpu7x:2x2x1
jax: 0.10.0
libtpu: 0.0.40
codegen_flags: <defaults>
</compile_context>

<pallas_src>
import functools

import jax
import jax.numpy as jnp
from jax.experimental import pallas as pl
from jax.experimental.pallas import tpu as pltpu

_LANE = 128
_NEG_SLOPE = 0.01  # F.leaky_relu default negative_slope


def _round_up(x, m):
    return (x + m - 1) // m * m


def _pad2d(a, rows, cols):
    pr, pc = rows - a.shape[0], cols - a.shape[1]
    if pr or pc:
        a = jnp.pad(a, ((0, pr), (0, pc)))
    return a


def _vmem_capacity():
    default = 64 * 1024 * 1024
    try:
        info = pltpu.get_tpu_info()
        return int(getattr(info, "vmem_capacity_bytes", default))
    except Exception:
        return default


# --------------------------------------------------------------------------
# Small/medium-graph path: one fully fused kernel (everything VMEM-resident).
# --------------------------------------------------------------------------
def _gcn2_fused_kernel(adj_ref, dinv_ref, x_ref, w1_ref, b1_ref, w2_ref,
                       b2_ref, o_ref):
    a = adj_ref[...]                     # [N, N] bf16 counts (+ remaining self loops)
    dinv = dinv_ref[...]                 # [N, 1] f32

    # layer 1: h = leaky_relu(dinv * (A @ bf16(dinv * (X @ W1))) + b1)
    xw = jnp.dot(x_ref[...], w1_ref[...], preferred_element_type=jnp.float32)
    msg1 = (dinv * xw).astype(jnp.bfloat16)
    h = jnp.dot(a, msg1, preferred_element_type=jnp.float32)
    h = dinv * h + b1_ref[...]
    h = jnp.where(h > 0.0, h, _NEG_SLOPE * h)

    # (dropout p=0, batch_norm / residual / jump_knowledge disabled, use_softmax=0)

    # layer 2: out = dinv * (A @ bf16(dinv * (h @ W2))) + b2
    hw = jnp.dot(h, w2_ref[...], preferred_element_type=jnp.float32)
    msg2 = (dinv * hw).astype(jnp.bfloat16)
    out = jnp.dot(a, msg2, preferred_element_type=jnp.float32)
    o_ref[...] = (dinv * out + b2_ref[...]).astype(o_ref.dtype)


def _forward_fused(adj, dinv, x, w1, b1, w2, b2, vmem_cap):
    n, f_in = x.shape
    hid = w1.shape[1]
    f_out = w2.shape[1]

    n_pad = _round_up(n, 8)
    f_in_pad = _round_up(f_in, _LANE)
    hid_pad = _round_up(hid, _LANE)
    o_pad = _round_up(f_out, _LANE)

    adj_p = _pad2d(adj, n_pad, n_pad)
    dinv_p = _pad2d(dinv, n_pad, 1)
    x_p = _pad2d(x, n_pad, f_in_pad)
    w1_p = _pad2d(w1, f_in_pad, hid_pad)
    b1_p = _pad2d(b1.reshape(1, -1), 1, hid_pad)
    w2_p = _pad2d(w2, hid_pad, o_pad)
    b2_p = _pad2d(b2.reshape(1, -1), 1, o_pad)

    # Generous in-kernel footprint estimate (adjacency + f32/bf16 temporaries).
    need = (2 * n_pad * n_pad
            + 4 * n_pad * (f_in_pad + hid_pad + o_pad) * 2
            + 2 * n_pad * (hid_pad + o_pad)
            + 4 * (f_in_pad * hid_pad + hid_pad * o_pad)
            + (4 << 20))
    vmem_limit = int(min(vmem_cap - (4 << 20), max(need, 32 << 20)))

    vmem = pl.BlockSpec(memory_space=pltpu.MemorySpace.VMEM)
    cost = pl.CostEstimate(
        flops=int(2 * (n_pad * f_in_pad * hid_pad + n_pad * n_pad * hid_pad
                       + n_pad * hid_pad * o_pad + n_pad * n_pad * o_pad)),
        transcendentals=0,
        bytes_accessed=int(2 * n_pad * n_pad
                           + 4 * (n_pad * (f_in_pad + o_pad + 1)
                                  + f_in_pad * hid_pad + hid_pad * o_pad
                                  + hid_pad + o_pad)),
    )
    out = pl.pallas_call(
        _gcn2_fused_kernel,
        out_shape=jax.ShapeDtypeStruct((n_pad, o_pad), jnp.float32),
        in_specs=[vmem] * 7,
        out_specs=vmem,
        cost_estimate=cost,
        compiler_params=pltpu.CompilerParams(vmem_limit_bytes=vmem_limit),
    )(adj_p, dinv_p, x_p, w1_p, b1_p, w2_p, b2_p)
    return out[:n, :f_out]


# --------------------------------------------------------------------------
# Large-graph path: hoisted feature transform + row-tiled propagation.
# --------------------------------------------------------------------------
def _feat_transform_kernel(feat_ref, w_ref, dinv_ref, o_ref):
    # msg = bf16(dinv * (feat @ W)); computed ONCE per layer (own row grid),
    # not per adjacency row tile.
    f = feat_ref[...]
    w = w_ref[...].astype(f.dtype)       # bf16 x bf16 for layer 2, f32 x f32 for layer 1
    fw = jnp.dot(f, w, preferred_element_type=jnp.float32)
    o_ref[...] = (dinv_ref[...] * fw).astype(o_ref.dtype)


def _feat_transform_call(feat, w, dinv, *, tm, vmem_limit):
    n_pad, f_in = feat.shape
    f_out = w.shape[1]
    grid = (n_pad // tm,)
    cost = pl.CostEstimate(
        flops=int(2 * n_pad * f_in * f_out),
        transcendentals=0,
        bytes_accessed=int(feat.size * feat.dtype.itemsize + w.size * 4
                           + n_pad * 4 + n_pad * f_out * 2),
    )
    return pl.pallas_call(
        _feat_transform_kernel,
        out_shape=jax.ShapeDtypeStruct((n_pad, f_out), jnp.bfloat16),
        grid_spec=pltpu.PrefetchScalarGridSpec(
            num_scalar_prefetch=0,
            grid=grid,
            in_specs=[
                pl.BlockSpec((tm, f_in), lambda i: (i, 0)),
                pl.BlockSpec((f_in, f_out), lambda i: (0, 0)),
                pl.BlockSpec((tm, 1), lambda i: (i, 0)),
            ],
            out_specs=pl.BlockSpec((tm, f_out), lambda i: (i, 0)),
        ),
        compiler_params=pltpu.CompilerParams(
            dimension_semantics=("parallel",),
            vmem_limit_bytes=vmem_limit,
        ),
        cost_estimate=cost,
    )(feat, w, dinv)


def _propagate_kernel(negative_slope, adj_ref, msg_ref, dinv_ref, b_ref, o_ref):
    # Per row tile: just adj_tile @ msg (bf16 MXU, f32 acc) + epilogue.
    agg = jnp.dot(adj_ref[...], msg_ref[...], preferred_element_type=jnp.float32)
    out = dinv_ref[...] * agg + b_ref[...]
    if negative_slope is not None:
        out = jnp.where(out > 0.0, out, negative_slope * out)
    o_ref[...] = out.astype(o_ref.dtype)


def _propagate_call(adj, msg, dinv, b2d, *, negative_slope, out_dtype, tm,
                    vmem_limit):
    n_pad = adj.shape[0]
    f_out = msg.shape[1]
    grid = (n_pad // tm,)
    kernel = functools.partial(_propagate_kernel, negative_slope)
    out_itemsize = jnp.dtype(out_dtype).itemsize
    cost = pl.CostEstimate(
        flops=int(2 * n_pad * n_pad * f_out),
        transcendentals=0,
        bytes_accessed=int(adj.size * 2 + msg.size * 2 + n_pad * 4
                           + f_out * 4 + n_pad * f_out * out_itemsize),
    )
    return pl.pallas_call(
        kernel,
        out_shape=jax.ShapeDtypeStruct((n_pad, f_out), out_dtype),
        grid_spec=pltpu.PrefetchScalarGridSpec(
            num_scalar_prefetch=0,
            grid=grid,
            in_specs=[
                pl.BlockSpec((tm, n_pad), lambda i: (i, 0)),     # adj row tile (streamed)
                pl.BlockSpec((n_pad, f_out), lambda i: (0, 0)),  # messages (fetched once)
                pl.BlockSpec((tm, 1), lambda i: (i, 0)),         # dinv row tile
                pl.BlockSpec((1, f_out), lambda i: (0, 0)),      # bias
            ],
            out_specs=pl.BlockSpec((tm, f_out), lambda i: (i, 0)),
        ),
        compiler_params=pltpu.CompilerParams(
            dimension_semantics=("parallel",),     # independent row tiles (megacore)
            vmem_limit_bytes=vmem_limit,
        ),
        cost_estimate=cost,
    )(adj, msg, dinv, b2d)


def _pick_tiling(n, f_max, requested_tm, vmem_cap):
    """tm multiple of 128, even grid when >1 tile, VMEM budget from tile sizes."""
    budget = int(vmem_cap * 3 // 4)
    tm = max(_LANE, _round_up(requested_tm, _LANE))
    tm = min(tm, _round_up(n, _LANE))

    def need(tm_, n_pad_):
        return (2 * tm_ * n_pad_ * 2        # double-buffered bf16 adjacency row tile
                + 2 * n_pad_ * f_max * 2    # resident bf16 messages (2-buffer budget)
                + 2 * tm_ * f_max * 4       # double-buffered f32 output tile
                + (2 << 20))                # misc / compiler scratch headroom

    while True:
        n_pad = _round_up(n, tm)
        ntiles = n_pad // tm
        if ntiles > 1 and ntiles % 2 == 1:  # even grid -> both v7x TensorCores busy
            n_pad += tm
        if need(tm, n_pad) <= budget or tm <= _LANE:
            break
        tm -= _LANE

    vmem_limit = int(min(vmem_cap - (4 << 20),
                         max(need(tm, n_pad) + (4 << 20), 32 << 20)))
    return tm, n_pad, vmem_limit


def _forward_tiled(adj, dinv, x, w1, b1, w2, b2, requested_tm, vmem_cap):
    # TODO(synk): for genuinely huge sparse graphs a CSR / scalar-prefetch gather
    # kernel (O(E) traffic) would replace this dense O(N^2) formulation; also a
    # column-tile grid axis would be needed once the resident msg block no
    # longer fits VMEM.
    n, f_in = x.shape
    hid = w1.shape[1]
    f_out = w2.shape[1]

    f_in_pad = _round_up(f_in, _LANE)
    hid_pad = _round_up(hid, _LANE)
    o_pad = _round_up(f_out, _LANE)
    tm, n_pad, vmem_limit = _pick_tiling(n, max(hid_pad, o_pad), requested_tm,
                                         vmem_cap)

    adj_p = _pad2d(adj, n_pad, n_pad)                 # bf16, built in bf16 upstream
    dinv_p = _pad2d(dinv, n_pad, 1)
    x_p = _pad2d(x, n_pad, f_in_pad)
    w1_p = _pad2d(w1, f_in_pad, hid_pad)
    b1_p = _pad2d(b1.reshape(1, -1), 1, hid_pad)
    w2_p = _pad2d(w2, hid_pad, o_pad)
    b2_p = _pad2d(b2.reshape(1, -1), 1, o_pad)

    # layer 1: hoisted transform, then row-tiled propagation (+ leaky_relu),
    # activations kept in bf16 in HBM.
    msg1 = _feat_transform_call(x_p, w1_p, dinv_p, tm=tm, vmem_limit=vmem_limit)
    h = _propagate_call(adj_p, msg1, dinv_p, b1_p, negative_slope=_NEG_SLOPE,
                        out_dtype=jnp.bfloat16, tm=tm, vmem_limit=vmem_limit)

    # layer 2: same structure, final output in f32, no activation.
    msg2 = _feat_transform_call(h, w2_p, dinv_p, tm=tm, vmem_limit=vmem_limit)
    out = _propagate_call(adj_p, msg2, dinv_p, b2_p, negative_slope=None,
                          out_dtype=jnp.float32, tm=tm, vmem_limit=vmem_limit)
    return out[:n, :f_out]


# --------------------------------------------------------------------------
# Public wrapper
# --------------------------------------------------------------------------
def gnn_encoder_forward(x, edge_index, w1, b1, w2, b2, *, row_block=None):
    """2-layer GCN GNNEncoder forward. x: [N, Fin] f32, edge_index: [2, E] int."""
    n = x.shape[0]
    src = edge_index[0].astype(jnp.int32)
    dst = edge_index[1].astype(jnp.int32)
    idx = jnp.arange(n, dtype=jnp.int32)

    # O(E) degree / normalization (PyG gcn_norm, add_remaining_self_loops:
    # existing explicit self loops keep their multiplicity, nodes without one
    # get exactly one unit self loop).
    ones_e = jnp.ones(dst.shape, jnp.float32)
    self_cnt = jnp.zeros((n,), jnp.float32).at[dst].add(
        jnp.where(src == dst, 1.0, 0.0))
    in_cnt = jnp.zeros((n,), jnp.float32).at[dst].add(ones_e)
    add_self = jnp.where(self_cnt > 0.0, 0.0, 1.0)
    deg = in_cnt + add_self
    dinv = jnp.where(deg > 0.0, jax.lax.rsqrt(deg), 0.0).reshape(n, 1)

    # TODO(synk): edge_index -> dense adjacency scatter has no Pallas
    # equivalent (data-dependent scatter); it stays as one XLA op, built
    # directly in bf16 (exact for edge multiplicities <= 256).
    adj = jnp.zeros((n, n), jnp.bfloat16).at[dst, src].add(
        jnp.ones(dst.shape, jnp.bfloat16))
    adj = adj.at[idx, idx].add(add_self.astype(jnp.bfloat16))

    vmem_cap = _vmem_capacity()
    # adjacency read once (both layers) in the fused kernel vs twice when tiled
    # -> prefer fused as long as it fits VMEM (128 MiB v5e/v6e, 64 MiB v7x).
    fused_cutoff = 4096 if vmem_cap >= (100 << 20) else 2048
    if row_block is None and n <= fused_cutoff:
        return _forward_fused(adj, dinv, x, w1, b1, w2, b2, vmem_cap)
    return _forward_tiled(adj, dinv, x, w1, b1, w2, b2, row_block or 512,
                          vmem_cap)


# --------------------------------------------------------------------------
# Pure-JAX reference (for correctness checking only)
# --------------------------------------------------------------------------
def _reference(x, edge_index, w1, b1, w2, b2):
    n = x.shape[0]
    src, dst = edge_index[0], edge_index[1]
    idx = jnp.arange(n)
    adj = jnp.zeros((n, n), jnp.float32).at[dst, src].add(1.0)
    diag = adj[idx, idx]
    adj = adj.at[idx, idx].add(jnp.where(diag > 0.0, 0.0, 1.0))
    deg = adj.sum(axis=1)
    dinv = jnp.where(deg > 0, jax.lax.rsqrt(deg), 0.0)
    a_hat = adj * dinv[:, None] * dinv[None, :]
    h = a_hat @ (x @ w1) + b1
    h = jnp.where(h > 0, h, _NEG_SLOPE * h)
    return a_hat @ (h @ w2) + b2


if __name__ == "__main__":
    N, F_IN, HID, F_OUT, E = 16, 8, 32, 16, 32

    key = jax.random.PRNGKey(0)
    k_x, k_e1, k_e2, k_w1, k_w2 = jax.random.split(key, 5)

    x = jax.random.normal(k_x, (N, F_IN), dtype=jnp.float32)
    src = jax.random.randint(k_e1, (E,), 0, N, dtype=jnp.int32)
    dst = jax.random.randint(k_e2, (E,), 0, N, dtype=jnp.int32)
    edge_index = jnp.stack([src, dst], axis=0)               # [2, E]

    # Deterministic parameter init (PyG inits biases to zero).
    w1 = jax.random.normal(k_w1, (F_IN, HID), dtype=jnp.float32) * (1.0 / jnp.sqrt(F_IN))
    b1 = jnp.zeros((HID,), jnp.float32)
    w2 = jax.random.normal(k_w2, (HID, F_OUT), dtype=jnp.float32) * (1.0 / jnp.sqrt(HID))
    b2 = jnp.zeros((F_OUT,), jnp.float32)

    ref = _reference(x, edge_index, w1, b1, w2, b2)

    # Small-graph path: single fused kernel (bf16 propagation, f32 accumulate).
    out = jax.block_until_ready(gnn_encoder_forward(x, edge_index, w1, b1, w2, b2))
    assert out.shape == (N, F_OUT) and out.dtype == jnp.float32
    assert jnp.allclose(out, ref, rtol=5e-2, atol=5e-2), "fused path mismatch"

    # Row-tiled path (large-N code path: hoisted msg kernel + propagation
    # kernel), exercised at a small size; bf16 propagation -> loose tolerance.
    out_t = jax.block_until_ready(
        gnn_encoder_forward(x, edge_index, w1, b1, w2, b2, row_block=128))
    assert out_t.shape == (N, F_OUT)
    assert jnp.allclose(out_t, ref, rtol=5e-2, atol=5e-2), "tiled path mismatch"

    print("KERNEL_OK")
</pallas_src>

<mosaic_0001>
module attributes {stable_mosaic.version = 11 : i64} {
  func.func @_gcn2_fused_kernel(%arg0: memref<16x16xbf16, #tpu.memory_space<vmem>>, %arg1: memref<16x1xf32, #tpu.memory_space<vmem>>, %arg2: memref<16x128xf32, #tpu.memory_space<vmem>>, %arg3: memref<128x128xf32, #tpu.memory_space<vmem>>, %arg4: memref<1x128xf32, #tpu.memory_space<vmem>>, %arg5: memref<128x128xf32, #tpu.memory_space<vmem>>, %arg6: memref<1x128xf32, #tpu.memory_space<vmem>>, %arg7: memref<16x128xf32, #tpu.memory_space<vmem>>) attributes {dimension_semantics = [], scalar_prefetch = 0 : i64, scratch_operands = 0 : i64, tpu.core_type = #tpu.core_type<tc>} {
    %c0 = arith.constant 0 : index
    %c0_0 = arith.constant 0 : index
    %0 = vector.load %arg0[%c0, %c0_0] : memref<16x16xbf16, #tpu.memory_space<vmem>>, vector<16x16xbf16>
    %c0_1 = arith.constant 0 : index
    %c0_2 = arith.constant 0 : index
    %1 = vector.load %arg1[%c0_1, %c0_2] : memref<16x1xf32, #tpu.memory_space<vmem>>, vector<16x1xf32>
    %c0_3 = arith.constant 0 : index
    %c0_4 = arith.constant 0 : index
    %2 = vector.load %arg2[%c0_3, %c0_4] : memref<16x128xf32, #tpu.memory_space<vmem>>, vector<16x128xf32>
    %c0_5 = arith.constant 0 : index
    %c0_6 = arith.constant 0 : index
    %3 = vector.load %arg3[%c0_5, %c0_6] : memref<128x128xf32, #tpu.memory_space<vmem>>, vector<128x128xf32>
    %cst = arith.constant dense<0.000000e+00> : vector<16x128xf32>
    %4 = tpu.matmul %2, %3, %cst {dimension_numbers = #tpu.dot_dimension_numbers<[1], [0], [0], [1], [0, 0, 1, 1], [], []>} : vector<16x128xf32>, vector<128x128xf32>, vector<16x128xf32> -> vector<16x128xf32>
    %5 = vector.broadcast %1 : vector<16x1xf32> to vector<16x128xf32>
    %6 = arith.mulf %5, %4 : vector<16x128xf32>
    %7 = arith.truncf %6 : vector<16x128xf32> to vector<16x128xbf16>
    %cst_7 = arith.constant dense<0.000000e+00> : vector<16x128xf32>
    %8 = tpu.matmul %0, %7, %cst_7 {dimension_numbers = #tpu.dot_dimension_numbers<[1], [0], [0], [1], [0, 0, 1, 1], [], []>} : vector<16x16xbf16>, vector<16x128xbf16>, vector<16x128xf32> -> vector<16x128xf32>
    %9 = vector.broadcast %1 : vector<16x1xf32> to vector<16x128xf32>
    %10 = arith.mulf %9, %8 : vector<16x128xf32>
    %c0_8 = arith.constant 0 : index
    %c0_9 = arith.constant 0 : index
    %11 = vector.load %arg4[%c0_8, %c0_9] : memref<1x128xf32, #tpu.memory_space<vmem>>, vector<1x128xf32>
    %12 = vector.broadcast %11 : vector<1x128xf32> to vector<16x128xf32>
    %13 = arith.addf %10, %12 : vector<16x128xf32>
    %cst_10 = arith.constant 0.000000e+00 : f32
    %14 = vector.broadcast %cst_10 : f32 to vector<16x128xf32>
    %15 = arith.cmpf ogt, %13, %14 : vector<16x128xf32>
    %cst_11 = arith.constant 0.00999999977 : f32
    %16 = vector.broadcast %cst_11 : f32 to vector<16x128xf32>
    %17 = arith.mulf %16, %13 : vector<16x128xf32>
    %18 = arith.select %15, %13, %17 : vector<16x128xi1>, vector<16x128xf32>
    %c0_12 = arith.constant 0 : index
    %c0_13 = arith.constant 0 : index
    %19 = vector.load %arg5[%c0_12, %c0_13] : memref<128x128xf32, #tpu.memory_space<vmem>>, vector<128x128xf32>
    %cst_14 = arith.constant dense<0.000000e+00> : vector<16x128xf32>
    %20 = tpu.matmul %18, %19, %cst_14 {dimension_numbers = #tpu.dot_dimension_numbers<[1], [0], [0], [1], [0, 0, 1, 1], [], []>} : vector<16x128xf32>, vector<128x128xf32>, vector<16x128xf32> -> vector<16x128xf32>
    %21 = vector.broadcast %1 : vector<16x1xf32> to vector<16x128xf32>
    %22 = arith.mulf %21, %20 : vector<16x128xf32>
    %23 = arith.truncf %22 : vector<16x128xf32> to vector<16x128xbf16>
    %cst_15 = arith.constant dense<0.000000e+00> : vector<16x128xf32>
    %24 = tpu.matmul %0, %23, %cst_15 {dimension_numbers = #tpu.dot_dimension_numbers<[1], [0], [0], [1], [0, 0, 1, 1], [], []>} : vector<16x16xbf16>, vector<16x128xbf16>, vector<16x128xf32> -> vector<16x128xf32>
    %25 = vector.broadcast %1 : vector<16x1xf32> to vector<16x128xf32>
    %26 = arith.mulf %25, %24 : vector<16x128xf32>
    %c0_16 = arith.constant 0 : index
    %c0_17 = arith.constant 0 : index
    %27 = vector.load %arg6[%c0_16, %c0_17] : memref<1x128xf32, #tpu.memory_space<vmem>>, vector<1x128xf32>
    %28 = vector.broadcast %27 : vector<1x128xf32> to vector<16x128xf32>
    %29 = arith.addf %26, %28 : vector<16x128xf32>
    %c0_18 = arith.constant 0 : index
    %c0_19 = arith.constant 0 : index
    %30 = vector.load %arg7[%c0_18, %c0_19] : memref<16x128xf32, #tpu.memory_space<vmem>>, vector<16x128xf32>
    tpu.vector_store %arg7[%c0_18, %c0_19], %29 {strides = array<i32>} : memref<16x128xf32, #tpu.memory_space<vmem>>, vector<16x128xf32>,
    return
  }
}

</mosaic_0001>

<bundles_post_ra>
// kernel: tpu_custom_call.1
= control target key start
LH: loop header
LB: loop body
LE: loop exit
PB: predicated region body
PF: predicated region fallthrough
CT: control target
= control target key end

     0   :  { %12 = vsyncpa [#allocation3], 0  ;;  %s800_s0 = inlined_call_operand.vmem [shape: bf16[16,16], index: 0, kind: input, shape index: {}]   ;;  %s801_s1 = inlined_call_operand.vmem [shape: f32[16,1], index: 1, kind: input, shape index: {}]   ;;  %s802_s2 = inlined_call_operand.vmem [shape: f32[16,128], index: 2, kind: input, shape index: {}]   ;;  %s803_s3 = inlined_call_operand.hbm [shape: f32[128,128], index: 3, kind: input, shape index: {}]   ;;  %s804_s4 = inlined_call_operand.vmem [shape: f32[1,128], index: 4, kind: input, shape index: {}]   ;;  %s805_s5 = inlined_call_operand.hbm [shape: f32[128,128], index: 5, kind: input, shape index: {}]   ;;  %s806_s6 = inlined_call_operand.vmem [shape: f32[1,128], index: 6, kind: input, shape index: {}]   ;;  %s807_s7 = inlined_call_operand.hbm [shape: f32[16,128], index: 7, kind: output, shape index: {}]  }
   0x1   :  { %13 = vsyncpa [#allocation6], 0 }
   0x2   :  { %14 = vsyncpa [#allocation4], 0  ;;  %s672_s24 = smov [#allocation2]   ;;  %s600_s28 = scalar_lea.hbm %s803_s3, 2048 }
   0x3   :  { %s26_s25 = sshll.u32 %s672_s24, 4  ;;  %p601_p0 = scmp.ne.s32.totalorder %s803_s3, %s600_s28  ;;  %s27_s25 = int_to_ptr.vmem [resolvable:$true] %s26_s25 }
   0x4   :  { %p604_p1 = scmp.lt.u32.totalorder %s600_s28, %s803_s3 }
   0x6   :  { %p606_p2 = pnand %p604_p1, %p601_p0 }
   0x8   :  { %609 = shalt.err (!%p606_p2)
}
   0x9   :  { %s610_s10 = scalar_lea.vmem %s27_s25, 2048  ;;  %p615_p4 = scmp.lt.s32.totalorder %s27_s25, %s27_s25 }
   0xa   :  { %p611_p3 = scmp.ne.s32.totalorder %s27_s25, %s610_s10  ;;  %p616_p5 = scmp.lt.s32.totalorder %s610_s10, %s610_s10 }
   0xc   :  { %p617_p6 = por %p616_p5, %p615_p4 }
   0xe   :  { %p618_p7 = pnand %p617_p6, %p611_p3 }
  0x10   :  { %621 = shalt.err (!%p618_p7)
}
  0x11   :  { %s673_s11 = smov 128   ;;  %s674_s12 = smov 8  }
  0x12   :  { %32 = dma.hbm_to_vmem [thread:$0]  %s803_s3, 2048, %s27_s25, [#allocation3], %s673_s11, %s673_s11, %s674_s12  }
  0x13   :  { %s675_s15 = smov [#allocation5]   ;;  %s622_s19 = scalar_lea.hbm %s805_s5, 2048 }
  0x14   :  { %s40_s16 = sshll.u32 %s675_s15, 4  ;;  %p623_p8 = scmp.ne.s32.totalorder %s805_s5, %s622_s19  ;;  %s41_s16 = int_to_ptr.vmem [resolvable:$true] %s40_s16 }
  0x15   :  { %p626_p9 = scmp.lt.u32.totalorder %s622_s19, %s805_s5 }
  0x17   :  { %p628_p10 = pnand %p626_p9, %p623_p8 }
  0x19   :  { %631 = shalt.err (!%p628_p10)
}
  0x1a   :  { %s632_s24 = scalar_lea.vmem %s41_s16, 2048  ;;  %p637_p12 = scmp.lt.s32.totalorder %s41_s16, %s41_s16 }
  0x1b   :  { %p633_p11 = scmp.ne.s32.totalorder %s41_s16, %s632_s24  ;;  %p638_p13 = scmp.lt.s32.totalorder %s632_s24, %s632_s24 }
  0x1d   :  { %p639_p0 = por %p638_p13, %p637_p12 }
  0x1f   :  { %p640_p1 = pnand %p639_p0, %p633_p11 }
  0x21   :  { %643 = shalt.err (!%p640_p1)
}
  0x22   :  { %46 = dma.hbm_to_vmem [thread:$0]  %s805_s5, 2048, %s41_s16, [#allocation6], %s673_s11, %s673_s11, %s674_s12  }
  0x23   :  { %666 = dma.done.wait [#allocation3], 2048  }
  0x24   :  { %667 = vsyncadd [#allocation3], 4294965248 }
  0x25   :  { %668 = dma.done.wait [#allocation6], 2048  }
  0x26   :  { %669 = vsyncadd [#allocation6], 4294965248  ;;  %v676_v0 = vmov 0   ;;  %v62_v1 = vld [vmem:[#allocation2] sm:$0xff]  ;;  %v63_v2 = vld [vmem:[#allocation2 + $0x8] sm:$0xff]  ;;  %v677_v29 = vmov 0.0  }
  0x27   :  { %598 = vset.pattern.permute.xlu0 %v676_v0  ;;  %v64_v3 = vld [vmem:[#allocation2 + $0x10] sm:$0xff]  ;;  %v526_v4 = vpack.c.bf16 %v63_v2, %v62_v1  ;;  %v65_v5 = vld [vmem:[#allocation2 + $0x18] sm:$0xff]  ;;  %v66_v7 = vld [vmem:[#allocation2 + $0x20] sm:$0xff]  ;;  %479 = vmatprep.subr.bf16.mxu1 %v677_v29  ;;  %vm678_vm0 = vmmov 0   ;;  %vm171_vm1 = vcmask 130048   ;;  %s679_s14 = smov [#allocation7]  }
  0x28   :  { %v530_v6 = vpack.c.bf16 %v65_v5, %v64_v3  ;;  %v67_v8 = vld [vmem:[#allocation2 + $0x28] sm:$0xff]  ;;  %v68_v10 = vld [vmem:[#allocation2 + $0x30] sm:$0xff]  ;;  %v60_v11 = vld [vmem:[%s802_s2] sm:$0xff]  ;;  %481 = vmatprep.mubr.msk.bf16.mxu1 %vm678_vm0, %v677_v29  ;;  %s386_s15 = sshll.u32 %s679_s14, 4  ;;  %s387_s15 = int_to_ptr.vmem [resolvable:$true] %s386_s15 }
  0x29   :  { %527 = vmatprep.subr.bf16.mxu0 %v526_v4  ;;  %v534_v9 = vpack.c.bf16 %v67_v8, %v66_v7  ;;  %v69_v12 = vld [vmem:[#allocation2 + $0x38] sm:$0xff]  ;;  %476 = vmatprep.mubr.f32.mxu0 %v60_v11  ;;  %v58_v13 = vld [vmem:[%s801_s1] sm:$0xff]  ;;  %v59_v14 = vld [vmem:[%s801_s1 + $0x8] sm:$0xff]  ;;  %s644_s16 = scalar_lea.vmem %s387_s15, 256  ;;  %p649_p3 = scmp.lt.s32.totalorder %s387_s15, %s387_s15 }
  0x2a   :  { %529 = vmatpush3.bf16.msra.mxu0 %v526_v4  ;;  %155 = vperm.xlu0 %598, %v58_v13   ;;  %v538_v15 = vpack.c.bf16 %v69_v12, %v68_v10  ;;  %v70_v16 = vld [vmem:[#allocation2 + $0x40] sm:$0xff]  ;;  %v71_v17 = vld [vmem:[#allocation2 + $0x48] sm:$0xff]  ;;  %v72_v19 = vld [vmem:[#allocation2 + $0x50] sm:$0xff]  ;;  %p645_p2 = scmp.ne.s32.totalorder %s387_s15, %s644_s16  ;;  %p650_p4 = scmp.lt.s32.totalorder %s644_s16, %s644_s16 }
  0x2b   :  { %531 = vmatprep.subr.bf16.mxu0 %v530_v6  ;;  %v542_v18 = vpack.c.bf16 %v71_v17, %v70_v16  ;;  %v73_v20 = vld [vmem:[#allocation2 + $0x58] sm:$0xff]  ;;  %v74_v22 = vld [vmem:[#allocation2 + $0x60] sm:$0xff]  ;;  %v75_v23 = vld [vmem:[#allocation2 + $0x68] sm:$0xff] }
  0x2c   :  { %v546_v21 = vpack.c.bf16 %v73_v20, %v72_v19  ;;  %v550_v24 = vpack.c.bf16 %v75_v23, %v74_v22  ;;  %v76_v25 = vld [vmem:[#allocation2 + $0x70] sm:$0xff]  ;;  %v77_v26 = vld [vmem:[#allocation2 + $0x78] sm:$0xff]  ;;  %v61_v28 = vld [vmem:[%s802_s2 + $0x8] sm:$0xff]  ;;  %p651_p5 = por %p650_p4, %p649_p3 }
  0x2d   :  { %v554_v27 = vpack.c.bf16 %v77_v26, %v76_v25  ;;  %v233_v33 = vld [vmem:[#allocation5] sm:$0xff]  ;;  %v234_v34 = vld [vmem:[#allocation5 + $0x8] sm:$0xff]  ;;  %v235_v40 = vld [vmem:[#allocation5 + $0x10] sm:$0xff] }
  0x2e   :  { %533 = vmatpush3.bf16.msra.mxu0 %v530_v6  ;;  %160 = vperm.xlu0 %598, %v59_v14   ;;  %v558_v38 = vpack.c.bf16 %v234_v34, %v233_v33  ;;  %v236_v41 = vld [vmem:[#allocation5 + $0x18] sm:$0xff]  ;;  %v599_v42 = vld [vmem:[%s800_s0] sm:$0xff]   ;;  %v238_v45 = vld [vmem:[#allocation5 + $0x28] sm:$0xff]  ;;  %p652_p6 = pnand %p651_p5, %p645_p2 }
  0x2f   :  { %535 = vmatprep.subr.bf16.mxu0 %v534_v9  ;;  %v562_v43 = vpack.c.bf16 %v236_v41, %v235_v40  ;;  %v237_v44 = vld [vmem:[#allocation5 + $0x20] sm:$0xff]  ;;  %v239_v47 = vld [vmem:[#allocation5 + $0x30] sm:$0xff]  ;;  %v240_v48 = vld [vmem:[#allocation5 + $0x38] sm:$0xff] }
  0x30   :  { %v566_v46 = vpack.c.bf16 %v238_v45, %v237_v44  ;;  %v570_v49 = vpack.c.bf16 %v240_v48, %v239_v47  ;;  %v241_v50 = vld [vmem:[#allocation5 + $0x40] sm:$0xff]  ;;  %v242_v51 = vld [vmem:[#allocation5 + $0x48] sm:$0xff]  ;;  %v243_v53 = vld [vmem:[#allocation5 + $0x50] sm:$0xff] }
  0x31   :  { %v574_v52 = vpack.c.bf16 %v242_v51, %v241_v50  ;;  %v244_v54 = vld [vmem:[#allocation5 + $0x58] sm:$0xff]  ;;  %v245_v56 = vld [vmem:[#allocation5 + $0x60] sm:$0xff]  ;;  %v246_v57 = vld [vmem:[#allocation5 + $0x68] sm:$0xff] }
  0x32   :  { %537 = vmatpush3.bf16.msra.mxu0 %v534_v9  ;;  %v578_v55 = vpack.c.bf16 %v244_v54, %v243_v53  ;;  %v582_v58 = vpack.c.bf16 %v246_v57, %v245_v56  ;;  %v247_v59 = vld [vmem:[#allocation5 + $0x70] sm:$0xff]  ;;  %v248_v60 = vld [vmem:[#allocation5 + $0x78] sm:$0xff]  ;;  %v401_v63 = vld [vmem:[%s804_s4] ss:$0 sm:$0xff] }
  0x33   :  { %539 = vmatprep.subr.bf16.mxu0 %v538_v15  ;;  %v586_v61 = vpack.c.bf16 %v248_v60, %v247_v59  ;;  %v403_v17 = vld [vmem:[%s806_s6] ss:$0 sm:$0xff] }
  0x36   :  { %541 = vmatpush3.bf16.msra.mxu0 %v538_v15 }
  0x37   :  { %543 = vmatprep.subr.bf16.mxu0 %v542_v18 }
  0x3a   :  { %545 = vmatpush3.bf16.msra.mxu0 %v542_v18 }
  0x3b   :  { %547 = vmatprep.subr.bf16.mxu0 %v546_v21 }
  0x3e   :  { %549 = vmatpush3.bf16.msra.mxu0 %v546_v21 }
  0x3f   :  { %551 = vmatprep.subr.bf16.mxu0 %v550_v24 }
  0x42   :  { %553 = vmatpush3.bf16.msra.mxu0 %v550_v24 }
  0x43   :  { %555 = vmatprep.subr.bf16.mxu0 %v554_v27 }
  0x46   :  { %557 = vmatpush3.bf16.msra.mxu0 %v554_v27 }
  0x47   :  { %520 = vmatprep.subr.bf16.mxu0 %v677_v29 }
  0x49   :  { %477 = vmatmul.mubr.f32.vlgmr.msra.gmra.mrb[0].mxu0 %v61_v28 }
  0x4a   :  { %522 = vmatprep.mubr.msk.bf16.mxu0 %vm678_vm0, %v677_v29 }
  0xa9   :  { %v762_v30 = vpop.permute.xlu0 %155 }
  0xad   :  { %v764_v31 = vpop.permute.xlu0 %160 }
 0x11c   :  { %v478_v32 = vpop.f32.mrb[0].mxu0 }
 0x11d   :  { %v164_v35 = vmul.f32 %v478_v32, %v764_v31  ;;  %v144_v36 = vpop.f32.mrb[1].mxu0 }
 0x11e   :  { %v163_v37 = vmul.f32 %v762_v30, %v144_v36 }
 0x120   :  { %v165_v39 = vpack.c.bf16 %v164_v35, %v163_v37 }
 0x122   :  { %480 = vmatpush3.bf16.msra.mxu1 %v165_v39 }
 0x123   :  { %559 = vmatprep.subr.bf16.mxu1 %v558_v38 }
 0x125   :  { %482 = vmatmul.mubr.msk.bf16.vlgmr.msra.gmra.mrb[0].mxu1 %vm171_vm1, %v599_v42 }
 0x126   :  { %561 = vmatpush3.bf16.msra.mxu1 %v558_v38 }
 0x127   :  { %563 = vmatprep.subr.bf16.mxu1 %v562_v43 }
 0x12a   :  { %565 = vmatpush3.bf16.msra.mxu1 %v562_v43 }
 0x12b   :  { %567 = vmatprep.subr.bf16.mxu1 %v566_v46 }
 0x12e   :  { %569 = vmatpush3.bf16.msra.mxu1 %v566_v46 }
 0x12f   :  { %571 = vmatprep.subr.bf16.mxu1 %v570_v49 }
 0x132   :  { %573 = vmatpush3.bf16.msra.mxu1 %v570_v49 }
 0x133   :  { %575 = vmatprep.subr.bf16.mxu1 %v574_v52 }
 0x136   :  { %577 = vmatpush3.bf16.msra.mxu1 %v574_v52 }
 0x137   :  { %579 = vmatprep.subr.bf16.mxu1 %v578_v55 }
 0x13a   :  { %581 = vmatpush3.bf16.msra.mxu1 %v578_v55 }
 0x13b   :  { %583 = vmatprep.subr.bf16.mxu1 %v582_v58 }
 0x13e   :  { %585 = vmatpush3.bf16.msra.mxu1 %v582_v58 }
 0x13f   :  { %587 = vmatprep.subr.bf16.mxu1 %v586_v61 }
 0x142   :  { %589 = vmatpush3.bf16.msra.mxu1 %v586_v61 }
 0x1f8   :  { %v209_v62 = vpop.f32.mrb[0].mxu1 }
 0x1f9   :  { %v216_v0 = vmul.f32 %v209_v62, %v762_v30  ;;  %v483_v1 = vpop.f32.mrb[1].mxu1 }
 0x1fa   :  { %v212_v2 = vpop.f32.mrb[2].mxu1 }
 0x1fb   :  { %v225_v3 = vadd.f32 %v401_v63, %v216_v0  ;;  %v217_v4 = vmul.f32 %v212_v2, %v764_v31  ;;  %v484_v5 = vpop.f32.mrb[3].mxu1 }
 0x1fd   :  { %v226_v6 = vadd.f32 %v401_v63, %v217_v4  ;;  %vm227_vm2 = vcmp.gt.f32.partialorder %v225_v3, 0.0  ;;  %v229_v7 = vmul.f32 0.01, %v225_v3 }
 0x1ff   :  { %v230_v8 = vmul.f32 0.01, %v226_v6  ;;  %v231_v9 = vsel %vm227_vm2, %v225_v3, %v229_v7  ;;  %vm228_vm3 = vcmp.gt.f32.partialorder %v226_v6, 0.0 }
 0x200   :  { %517 = vmatprep.mubr.f32.mxu1 %v231_v9 }
 0x201   :  { %v232_v10 = vsel %vm228_vm3, %v226_v6, %v230_v8 }
 0x202   :  { %518 = vmatmul.mubr.f32.vlgmr.msra.gmra.mrb[4].mxu1 %v232_v10 }
 0x2d5   :  { %v519_v11 = vpop.f32.mrb[4].mxu1 }
 0x2d6   :  { %v325_v12 = vmul.f32 %v519_v11, %v764_v31  ;;  %v315_v13 = vpop.f32.mrb[5].mxu1 }
 0x2d7   :  { %v324_v14 = vmul.f32 %v315_v13, %v762_v30 }
 0x2d9   :  { %v326_v15 = vpack.c.bf16 %v325_v12, %v324_v14 }
 0x2db   :  { %521 = vmatpush3.bf16.msra.mxu0 %v326_v15 }
 0x2de   :  { %523 = vmatmul.mubr.msk.bf16.vlgmr.msra.gmra.mrb[4].mxu0 %vm171_vm1, %v599_v42 }
 0x3b1   :  { %v361_v16 = vpop.f32.mrb[4].mxu0 }
 0x3b2   :  { %v368_v18 = vmul.f32 %v361_v16, %v762_v30  ;;  %v524_v19 = vpop.f32.mrb[5].mxu0 }
 0x3b3   :  { %v364_v20 = vpop.f32.mrb[6].mxu0 }
 0x3b4   :  { %v377_v21 = vadd.f32 %v403_v17, %v368_v18  ;;  %v369_v22 = vmul.f32 %v364_v20, %v764_v31  ;;  %v525_v23 = vpop.f32.mrb[7].mxu0 }
 0x3b6   :  { %379 = vst [vmem:[#allocation7] sm:$0xff] %v377_v21  ;;  %v378_v24 = vadd.f32 %v403_v17, %v369_v22 }
 0x3b8   :  { %380 = vst [vmem:[#allocation7 + $0x8] sm:$0xff] %v378_v24 }
 0x3b9   :  { %655 = shalt.err (!%p652_p6)
}
 0x3ba   :  { %s656_s18 = scalar_lea.hbm %s807_s7, 256 }
 0x3bb   :  { %p657_p7 = scmp.ne.s32.totalorder %s807_s7, %s656_s18  ;;  %p660_p8 = scmp.lt.u32.totalorder %s656_s18, %s807_s7 }
 0x3bd   :  { %p662_p9 = pnand %p660_p8, %p657_p7 }
 0x3bf   :  { %665 = shalt.err (!%p662_p9)
}
 0x3c0   :  { %392 = dma.vmem_to_hbm [thread:$0]  %s387_s15, 256, %s807_s7, [#allocation4], %s673_s11, %s673_s11, %s674_s12  }
 0x3c1   :  { %670 = dma.done.wait [#allocation4], 256  }
 0x3c2   :  { %671 = vsyncadd [#allocation4], 4294967040 }
 0x3c3   :  { %396 = vsyncpa [#allocation3], 1 }
 0x3c4   :  { %397 = vsyncpa [#allocation6], 1 }
 0x3c5   :  { %398 = vsyncpa [#allocation4], 1 }

</bundles_post_ra>
